<compile_context>
chip_gen: v7x
topology: tpu7x:2x2x1
jax: 0.10.0
libtpu: 0.0.40
codegen_flags: <defaults>
</compile_context>

<pallas_src>
import functools

import jax
import jax.numpy as jnp
from jax.experimental import pallas as pl
from jax.experimental.pallas import tpu as pltpu


_TARGET_TILE_BYTES = 6 * 1024 * 1024   # per input buffer, padded-lane f32 accounting
_VMEM_LIMIT_BYTES = 48 * 1024 * 1024   # > v5e 16 MiB default, < v7x 64 MiB physical


def _round_up(n, m):
    return ((n + m - 1) // m) * m


def _rows_kernel(x_ref, o_ref, *, tb, n_rows):
    """2-D path: x_ref (TB, C) logits tile; o_ref (1, 8, 128) per-tile partial."""
    x = x_ref[...].astype(jnp.float32)
    m = jnp.max(x, axis=1, keepdims=True)            # XLU lane reduce
    e = jnp.exp(x - m)                                # EUP
    s1 = jnp.sum(e, axis=1, keepdims=True)            # (TB, 1)
    s2 = jnp.sum(e * e, axis=1, keepdims=True)        # (TB, 1)
    inv = pl.reciprocal(s1, approx=False)              # per-row only -> cheap exact
    per_row = s2 * inv * inv                           # sum_c softmax(x)_c^2 per row
    # Mask rows of the (possibly padded) last tile before reducing.
    row = pl.program_id(0) * tb + jax.lax.broadcasted_iota(jnp.int32, per_row.shape, 0)
    per_row = jnp.where(row < n_rows, per_row, 0.0)
    o_ref[...] = jnp.broadcast_to(jnp.sum(per_row), o_ref.shape)


def _chan_sublane_kernel(x_ref, o_ref, *, tl, n_pos):
    """N-D path: x_ref (1, C, TL); softmax dim (C) lives in the sublane axis."""
    x = x_ref[...].astype(jnp.float32)
    m = jnp.max(x, axis=1, keepdims=True)             # (1, 1, TL) sublane reduce
    e = jnp.exp(x - m)
    s1 = jnp.sum(e, axis=1, keepdims=True)
    s2 = jnp.sum(e * e, axis=1, keepdims=True)
    inv = pl.reciprocal(s1, approx=False)
    per_pos = s2 * inv * inv                           # (1, 1, TL)
    # Mask padded lane positions of the ragged last tile.
    pos = pl.program_id(1) * tl + jax.lax.broadcasted_iota(jnp.int32, per_pos.shape, 2)
    per_pos = jnp.where(pos < n_pos, per_pos, 0.0)
    o_ref[...] = jnp.broadcast_to(jnp.sum(per_pos), o_ref.shape)


def _loss_2d(x):
    B, C = x.shape
    itemsize = jnp.dtype(x.dtype).itemsize

    # VMEM-accurate tile sizing: lanes pad to 128, f32 compute accounting.
    bytes_per_row = max(128, _round_up(C, 128)) * 4
    tb = max(8, _TARGET_TILE_BYTES // bytes_per_row)
    tb = min(tb, B)
    if tb >= B and B > 8:
        # Whole input fits one tile: split so both v7x TensorCores get work.
        tb = _round_up((B + 1) // 2, 8)
    if tb < B:
        tb = max(8, (tb // 8) * 8)
    tb = min(tb, B)
    num_tiles = pl.cdiv(B, tb)

    partials = pl.pallas_call(
        functools.partial(_rows_kernel, tb=tb, n_rows=B),
        out_shape=jax.ShapeDtypeStruct((num_tiles, 8, 128), jnp.float32),
        grid=(num_tiles,),
        in_specs=[pl.BlockSpec((tb, C), lambda i: (i, 0))],
        out_specs=pl.BlockSpec((1, 8, 128), lambda i: (i, 0, 0)),
        compiler_params=pltpu.CompilerParams(
            dimension_semantics=("parallel",),
            vmem_limit_bytes=_VMEM_LIMIT_BYTES,
        ),
        cost_estimate=pl.CostEstimate(
            flops=6 * B * C,
            transcendentals=B * C,
            bytes_accessed=B * C * itemsize + num_tiles * 8 * 128 * 4,
        ),
    )(x)

    total = jnp.sum(partials[:, 0, 0])
    numel = B * C
    return total / jnp.float32(numel) - jnp.float32(1.0 / (C * C))


def _loss_nd(x):
    # (N, C, *spatial): softmax over dim=1; fold spatial dims into L (free view,
    # no transpose) and keep C in the sublane axis so lanes stay fully occupied.
    N, C = x.shape[0], x.shape[1]
    L = 1
    for d in x.shape[2:]:
        L *= d
    x3 = x.reshape(N, C, L)
    itemsize = jnp.dtype(x.dtype).itemsize

    bytes_per_pos = _round_up(C, 8) * 4                 # sublane-padded f32 column
    tl = max(128, (_TARGET_TILE_BYTES // bytes_per_pos) // 128 * 128)
    if tl >= L:
        tl = L                                           # full-extent lane block
        if N == 1 and L >= 256:
            # Single grid step would idle v7x's second core: split along L.
            tl = max(128, ((L + 1) // 2) // 128 * 128)
    grid_l = pl.cdiv(L, tl)

    partials = pl.pallas_call(
        functools.partial(_chan_sublane_kernel, tl=tl, n_pos=L),
        out_shape=jax.ShapeDtypeStruct((N, grid_l, 8, 128), jnp.float32),
        grid=(N, grid_l),
        in_specs=[pl.BlockSpec((1, C, tl), lambda n, l: (n, 0, l))],
        out_specs=pl.BlockSpec((1, 1, 8, 128), lambda n, l: (n, l, 0, 0)),
        compiler_params=pltpu.CompilerParams(
            dimension_semantics=("parallel", "parallel"),
            vmem_limit_bytes=_VMEM_LIMIT_BYTES,
        ),
        cost_estimate=pl.CostEstimate(
            flops=6 * N * C * L,
            transcendentals=N * C * L,
            bytes_accessed=N * C * L * itemsize + N * grid_l * 8 * 128 * 4,
        ),
    )(x3)

    total = jnp.sum(partials[:, :, 0, 0])
    numel = N * C * L
    return total / jnp.float32(numel) - jnp.float32(1.0 / (C * C))


def l2_softmax_loss(x):
    """L2SoftmaxLoss.forward(x): scalar f32 loss. Softmax over dim=1, MSE vs 1/C."""
    if x.ndim < 2:
        raise ValueError("L2SoftmaxLoss expects at least 2-D input (N, C, ...)")
    if x.ndim == 2:
        return _loss_2d(x)
    return _loss_nd(x)


def _reference(x):
    # Plain-JAX reference (matches the PyTorch module).
    x = x.astype(jnp.float32)
    p = jax.nn.softmax(x, axis=1)
    lbl = 1.0 / x.shape[1]
    return jnp.mean((p - lbl) ** 2)


if __name__ == "__main__":
    key = jax.random.PRNGKey(0)
    k1, k2 = jax.random.split(key)

    # 4-D case (N, C, H, W): softmax over dim=1, mean over all elements.
    x4 = jax.random.normal(k1, (2, 4, 16, 16), dtype=jnp.float32)
    loss4 = l2_softmax_loss(x4)
    jax.block_until_ready(loss4)
    ref4 = _reference(x4)
    assert jnp.allclose(loss4, ref4, rtol=1e-4, atol=1e-6), (loss4, ref4)

    # 2-D logits case (B, C).
    x2 = jax.random.normal(k2, (8, 32), dtype=jnp.float32)
    loss2 = l2_softmax_loss(x2)
    jax.block_until_ready(loss2)
    ref2 = _reference(x2)
    assert jnp.allclose(loss2, ref2, rtol=1e-4, atol=1e-6), (loss2, ref2)

    print("KERNEL_OK")
</pallas_src>

<mosaic_0001>
module attributes {stable_mosaic.version = 11 : i64} {
  func.func @_chan_sublane_kernel(%arg0: i32, %arg1: i32, %arg2: memref<1x4x256xf32, #tpu.memory_space<vmem>>, %arg3: memref<1x1x8x128xf32, #tpu.memory_space<vmem>>) attributes {dimension_semantics = [#tpu.dimension_semantics<parallel>, #tpu.dimension_semantics<parallel>], iteration_bounds = array<i64: 2, 1>, scalar_prefetch = 0 : i64, scratch_operands = 0 : i64, tpu.core_type = #tpu.core_type<tc>, window_params = [{transform_indices = @transform_0, window_bounds = array<i64: 1, 4, 256>}, {transform_indices = @transform_1, window_bounds = array<i64: 1, 1, 8, 128>}]} {
    %c0 = arith.constant 0 : index
    %c0_0 = arith.constant 0 : index
    %c0_1 = arith.constant 0 : index
    %0 = vector.load %arg2[%c0, %c0_0, %c0_1] : memref<1x4x256xf32, #tpu.memory_space<vmem>>, vector<1x4x256xf32>
    %cst = arith.constant dense<0xFF800000> : vector<1x256xf32>
    %1 = vector.multi_reduction <maximumf>, %0, %cst [1] : vector<1x4x256xf32> to vector<1x256xf32>
    %2 = vector.shape_cast %1 : vector<1x256xf32> to vector<1x1x256xf32>
    %3 = vector.broadcast %2 : vector<1x1x256xf32> to vector<1x4x256xf32>
    %4 = arith.subf %0, %3 : vector<1x4x256xf32>
    %5 = math.exp %4 : vector<1x4x256xf32>
    %cst_2 = arith.constant dense<0.000000e+00> : vector<1x256xf32>
    %6 = vector.multi_reduction <add>, %5, %cst_2 [1] : vector<1x4x256xf32> to vector<1x256xf32>
    %7 = vector.shape_cast %6 : vector<1x256xf32> to vector<1x1x256xf32>
    %8 = arith.mulf %5, %5 : vector<1x4x256xf32>
    %cst_3 = arith.constant dense<0.000000e+00> : vector<1x256xf32>
    %9 = vector.multi_reduction <add>, %8, %cst_3 [1] : vector<1x4x256xf32> to vector<1x256xf32>
    %10 = vector.shape_cast %9 : vector<1x256xf32> to vector<1x1x256xf32>
    %11 = tpu.reciprocal %7 : vector<1x1x256xf32> -> vector<1x1x256xf32>
    %12 = arith.mulf %10, %11 : vector<1x1x256xf32>
    %13 = arith.mulf %12, %11 : vector<1x1x256xf32>
    %c256_i32 = arith.constant 256 : i32
    %14 = arith.muli %arg1, %c256_i32 : i32
    %15 = tpu.iota {dimensions = array<i32: 2>} : vector<1x1x256xi32>
    %16 = vector.broadcast %14 : i32 to vector<1x1x256xi32>
    %17 = arith.addi %16, %15 : vector<1x1x256xi32>
    %c256_i32_4 = arith.constant 256 : i32
    %18 = vector.broadcast %c256_i32_4 : i32 to vector<1x1x256xi32>
    %19 = arith.cmpi slt, %17, %18 : vector<1x1x256xi32>
    %cst_5 = arith.constant 0.000000e+00 : f32
    %20 = vector.broadcast %cst_5 : f32 to vector<1x1x256xf32>
    %21 = arith.select %19, %13, %20 : vector<1x1x256xi1>, vector<1x1x256xf32>
    %22 = vector.shape_cast %21 : vector<1x1x256xf32> to vector<1x1x1x256xf32>
    %cst_6 = arith.constant dense<0.000000e+00> : vector<1xf32>
    %23 = vector.multi_reduction <add>, %22, %cst_6 [1, 2, 3] : vector<1x1x1x256xf32> to vector<1xf32>
    %24 = vector.shape_cast %23 : vector<1xf32> to vector<1x1x1x1xf32>
    %25 = vector.extract %24[0, 0, 0, 0] : f32 from vector<1x1x1x1xf32>
    %26 = vector.broadcast %25 : f32 to vector<1x1x8x128xf32>
    %c0_7 = arith.constant 0 : index
    %c0_8 = arith.constant 0 : index
    %c0_9 = arith.constant 0 : index
    %c0_10 = arith.constant 0 : index
    %27 = vector.load %arg3[%c0_7, %c0_8, %c0_9, %c0_10] : memref<1x1x8x128xf32, #tpu.memory_space<vmem>>, vector<1x1x8x128xf32>
    tpu.vector_store %arg3[%c0_7, %c0_8, %c0_9, %c0_10], %26 {strides = array<i32>} : memref<1x1x8x128xf32, #tpu.memory_space<vmem>>, vector<1x1x8x128xf32>,
    return
  }
  func.func @transform_0(%arg0: i32, %arg1: i32) -> (i32, i32, i32) {
    %c0_i32 = arith.constant 0 : i32
    %c0_i32_0 = arith.constant 0 : i32
    return %arg0, %c0_i32, %arg1 : i32, i32, i32
  }
  func.func @transform_1(%arg0: i32, %arg1: i32) -> (i32, i32, i32, i32) {
    %c0_i32 = arith.constant 0 : i32
    %c0_i32_0 = arith.constant 0 : i32
    %c0_i32_1 = arith.constant 0 : i32
    return %arg0, %arg1, %c0_i32, %c0_i32_0 : i32, i32, i32, i32
  }
}

</mosaic_0001>

<bundles_post_ra>
// kernel: tpu_custom_call.1
= control target key start
LH: loop header
LB: loop body
LE: loop exit
PB: predicated region body
PF: predicated region fallthrough
CT: control target
= control target key end

     0   :  { %6 = vsyncpa [#allocation3], 0  ;;  %s736_s0 = inlined_call_operand.hbm [shape: f32[2,4,256], index: 0, kind: input, shape index: {}]   ;;  %s737_s1 = inlined_call_operand.hbm [shape: f32[2,1,8,128], index: 1, kind: output, shape index: {}]  }
   0x1   :  { %8 = vsyncpa [#allocation3 + $0x1], 0 }
   0x2   :  { %9 = vsyncpa [#allocation4], 0 }
   0x3   :  { %11 = vsyncpa [#allocation4 + $0x1], 0  ;;  %s554_s6 = smov 0   ;;  %s556_s7 = smov 0  }
   0x4   :  { %s558_s8 = smov 0   ;;  %s560_s9 = smov 0  }
   0x5   :  { %s562_s10 = smov 0   ;;  %s564_s11 = smov 0  }
   0x6 LB: > { %s342_s12 = sadd.s32 4294967295, %s540_s11   ;;  %s343_s13 = sadd.s32 4294967294, %s540_s11   ;;  %s540_s11 = sphi %s564_s11, %s17_s11   ;;  %s536_s10 = sphi %s562_s10, %s753_s10   ;;  %s532_s9 = sphi %s560_s9, %s752_s9   ;;  %s528_s8 = sphi %s558_s8, %s751_s8   ;;  %s524_s7 = sphi %s556_s7, %s750_s7   ;;  %s520_s6 = sphi %s554_s6, %s749_s6  }
   0x7   : > { %s29_s14 = sadd.s32 1, %s536_s10  ;;  %s38_s15 = sadd.s32 1, %s528_s8 }
   0x8   : > { %p31_p0 = scmp.ge.s32.totalorder %s29_s14, 2  ;;  %p45_p1 = scmp.ne.s32.totalorder %s528_s8, %s524_s7 }
   0x9   : > { %p46_p2 = scmp.eq.s32.totalorder %s540_s11, 0  ;;  %p51_p3 = scmp.ne.s32.totalorder %s524_s7, %s520_s6 }
   0xa   : > { %s755_s14 = smov (%p31_p0, %s29_s14), 0  ;;  %p52_p5 = scmp.eq.s32.totalorder %s342_s12, 0 }
   0xb   : > { %p595_p4 = por %p46_p2, %p45_p1  ;;  %s33_s17 = ssub.s32 %s536_s10, %s755_s14 }
   0xc   : > { %p77_p6 = scmp.eq.s32.totalorder %s342_s12, 1  ;;  %p36_p7 = scmp.eq.s32.totalorder %s33_s17, 0 }
   0xd   : > { %p601_p8 = por %p52_p5, %p51_p3  ;;  %p83_p10 = scmp.eq.s32.totalorder %s343_s13, 1 }
   0xe   : > { %p605_p9 = por %p77_p6, %p45_p1  ;;  %p371_p13 = scmp.lt.s32.totalorder %s540_s11, 2 }
   0xf   : > { %s610_s20 = scalar_select %p36_p7, %s528_s8, %s38_s15  }
  0x10   : > { %s741_s19 = scalar_select %p605_p9, 1, 0 }
  0x11   : > { %p612_p11 = por %p83_p10, %p51_p3  ;;  %s103_s22 = sand.u32 1, %s528_s8  }
  0x12   : > { %s346_s23 = sshll.u32 %s103_s22, 3  ;;  %s356_s24 = sshll.u32 %s536_s10, 7 }
  0x13   : > { %s742_s21 = scalar_select %p612_p11, 1, 0 }
  0x14   : > { %s623_s27 = scalar_lea.hbm %s736_s0, %s356_s24  ;;  %s107_s28 = scalar_lea.vmem [#allocation2], %s346_s23 }
  0x15   : > { %s117_s29 = sshll.u32 %s107_s28, 4  ;;  %p629_p0 = pnand %p371_p13, %p595_p4  ;;  %s625_s29 = int_to_ptr.vmem [resolvable:$true] %s117_s29 }
  0x16   : > { %s104_s2 = scalar_lea.sflag [#allocation3], %s103_s22  ;;  %s428_s3 = scalar_lea.hbm %s623_s27, 128 }
  0x17   : > { %p429_p3 = scmp.ne.s32.totalorder %s623_s27, %s428_s3  ;;  %p430_p5 = pneg %p629_p0 }
  0x18   : > { %s433_s12 = scalar_lea.hbm %s736_s0, 256  ;;  %p434_p4 = scmp.lt.u32.totalorder %s623_s27, %s736_s0 }
  0x19   : > { %p431_p6 = pnand %p430_p5, %p429_p3  ;;  %p435_p10 = scmp.lt.u32.totalorder %s433_s12, %s428_s3 }
  0x1a   : > { %p437_p12 = scmp.lt.u32.totalorder %s428_s3, %s623_s27 }
  0x1b   : > { %p432_p7 = pneg %p431_p6  ;;  %p436_p13 = por %p435_p10, %p434_p4 }
  0x1d   : > { %p438_p1 = por %p437_p12, %p436_p13 }
  0x1f   : > { %p439_p2 = pnand %p438_p1, %p432_p7 }
  0x21   : > { %442 = shalt.err (!%p439_p2)
}
  0x22   : > { %s443_s16 = scalar_lea.vmem %s625_s29, 128  ;;  %s542_s17 = smov [#allocation2]  }
  0x23   : > { %p444_p3 = scmp.ne.s32.totalorder %s625_s29, %s443_s16  ;;  %s448_s22 = sshll.u32 %s542_s17, 4  ;;  %s449_s22 = int_to_ptr.vmem [resolvable:$false] %s448_s22 }
  0x24   : > { %s450_s23 = scalar_lea.vmem %s449_s22, 256  ;;  %p451_p9 = scmp.lt.s32.totalorder %s625_s29, %s449_s22 }
  0x25   : > { %p446_p6 = pnand %p444_p3, %p430_p5  ;;  %p452_p4 = scmp.lt.s32.totalorder %s450_s23, %s443_s16 }
  0x27   : > { %p447_p11 = pneg %p446_p6  ;;  %p453_p10 = por %p452_p4, %p451_p9 }
  0x29   : > { %p454_p12 = pnand %p453_p10, %p447_p11 }
  0x2b   : > { %457 = shalt.err (!%p454_p12)
}
  0x2c   : > { %366 = dma.hbm_to_vmem [thread:$0]  (!%p629_p0), %s623_s27, 128, %s625_s29, %s104_s2  }
  0x2d   : > { %p744_p1 = scmp.lt.s32.totalorder %s540_s11, 3  ;;  %p745_p2 = scmp.ge.s32.totalorder %s540_s11, 1 }
  0x2f   : > { %p123_p5 = pnand %p745_p2, %p744_p1 }
  0x30   : > { %s665_s24 = sand.u32 (!%p123_p5), 1, %s524_s7  }
  0x31   : > { %126 = sbr.rel (%p123_p5) target bundleno = 342 (0x156), region = 24  ;;  %s350_s25 = sshll.u32 (!%p123_p5), %s665_s24, 3 }
  0x32   : > { %s129_s26 = scalar_lea.sflag (!%p123_p5), [#allocation3], %s665_s24  ;;  %s132_s28 = scalar_lea.vmem (!%p123_p5), [#allocation2], %s350_s25 }
  0x38   : > { %511 = dma.done.wait (%p601_p8), %s129_s26, 128  }
  0x39   : > { %513 = vsyncadd (%p601_p8), %s129_s26, 4294967168  ;;  %vm156_vm0 = vcmask 1043456   ;;  %v152_v0 = vld [vmem:[%s132_s28] sm:$0xff]  ;;  %vm230_vm1 = vcmask 1040384   ;;  %s150_s18 = scalar_lea.vmem [#allocation5], %s350_s25  ;;  %s353_s29 = sshll.u32 %s532_s9, 7 }
  0x3a   : > { %v154_v1 = vcombine.high %v152_v0, %v152_v0  ;;  %v157_v2 = vsel %vm156_vm0, %v152_v0, -inf  ;;  %s260_s27 = sshll.u32 %s150_s18, 4  ;;  %s689_s4 = scalar_lea.hbm %s737_s1, %s353_s29  ;;  %s684_s27 = int_to_ptr.vmem [resolvable:$true] %s260_s27 }
  0x3b   : > { %v158_v3 = vrot.slane %v157_v2, 4  ;;  %s246_s5 = scalar_lea.sflag [#allocation4], %s665_s24  ;;  %s458_s12 = scalar_lea.vmem %s684_s27, 128 }
  0x3c   : > { %v164_v4 = vsel %vm156_vm0, %v154_v1, -inf  ;;  %p459_p8 = scmp.ne.s32.totalorder %s684_s27, %s458_s12  ;;  %p746_p9 = scmp.ne.s32.totalorder %s741_s19, 0 }
  0x3d   : > { %v159_v5 = vmax.f32 %v157_v2, %v158_v3  ;;  %v165_v6 = vrot.slane %v164_v4, 4  ;;  %s543_s9 = smov [#allocation5]  }
  0x3e   : > { %p460_p11 = pnand %p459_p8, %p746_p9  ;;  %s462_s13 = sshll.u32 %s543_s9, 4  ;;  %s463_s13 = int_to_ptr.vmem [resolvable:$false] %s462_s13 }
  0x3f   : > { %v160_v7 = vrot.slane %v159_v5, 2  ;;  %v166_v8 = vmax.f32 %v164_v4, %v165_v6  ;;  %s464_s15 = scalar_lea.vmem %s463_s13, 256  ;;  %p465_p7 = scmp.lt.s32.totalorder %s684_s27, %s463_s13 }
  0x40   : > { %p461_p0 = pneg %p460_p11  ;;  %p466_p13 = scmp.lt.s32.totalorder %s464_s15, %s458_s12 }
  0x41   : > { %v161_v9 = vmax.f32 %v159_v5, %v160_v7  ;;  %v167_v10 = vrot.slane %v166_v8, 2 }
  0x42   : > { %p467_p3 = por %p466_p13, %p465_p7 }
  0x43   : > { %v162_v11 = vrot.slane %v161_v9, 1  ;;  %v168_v12 = vmax.f32 %v166_v8, %v167_v10 }
  0x44   : > { %p468_p6 = pnand %p467_p3, %p461_p0 }
  0x45   : > { %v163_v13 = vmax.f32 %v161_v9, %v162_v11  ;;  %v169_v14 = vrot.slane %v168_v12, 1 }
  0x47   : > { %v170_v15 = vmax.f32 %v168_v12, %v169_v14 }
  0x49   : > { %v173_v16 = vcombine.low %v163_v13, %v170_v15 }
  0x4b   : > { %v175_v17 = vsub.f32 %v152_v0, %v173_v16 }
  0x4d   : > { %v176_v18 = vmul.f32 1.442695, %v175_v17 }
  0x4f   : > { %422 = vpow2.f32 %v176_v18 }
  0x59   : > { %v423_v19 = vpop.eup %422 }
  0x5a   : > { %v179_v20 = vcombine.high %v423_v19, %v423_v19  ;;  %v181_v21 = vsel %vm156_vm0, %v423_v19, 0.0  ;;  %v195_v22 = vmul.f32 %v423_v19, %v423_v19 }
  0x5b   : > { %v182_v23 = vrot.slane %v181_v21, 4 }
  0x5c   : > { %v188_v24 = vsel %vm156_vm0, %v179_v20, 0.0  ;;  %v197_v25 = vcombine.high %v195_v22, %v195_v22  ;;  %v199_v26 = vsel %vm156_vm0, %v195_v22, 0.0 }
  0x5d   : > { %v183_v27 = vadd.f32 %v182_v23, %v181_v21  ;;  %v189_v28 = vrot.slane %v188_v24, 4  ;;  %v200_v29 = vrot.slane %v199_v26, 4 }
  0x5e   : > { %v206_v30 = vsel %vm156_vm0, %v197_v25, 0.0 }
  0x5f   : > { %v184_v31 = vrot.slane %v183_v27, 2  ;;  %v190_v32 = vadd.f32 %v189_v28, %v188_v24  ;;  %v201_v33 = vadd.f32 %v200_v29, %v199_v26  ;;  %v207_v34 = vrot.slane %v206_v30, 4 }
  0x61   : > { %v185_v35 = vadd.f32 %v184_v31, %v183_v27  ;;  %v191_v36 = vrot.slane %v190_v32, 2  ;;  %v208_v37 = vadd.f32 %v207_v34, %v206_v30  ;;  %v202_v38 = vrot.slane %v201_v33, 2 }
  0x63   : > { %v186_v39 = vrot.slane %v185_v35, 1  ;;  %v192_v40 = vadd.f32 %v191_v36, %v190_v32  ;;  %v209_v41 = vrot.slane %v208_v37, 2  ;;  %v203_v44 = vadd.f32 %v202_v38, %v201_v33 }
  0x65   : > { %v187_v42 = vadd.f32 %v186_v39, %v185_v35  ;;  %v193_v43 = vrot.slane %v192_v40, 1  ;;  %v210_v46 = vadd.f32 %v209_v41, %v208_v37  ;;  %v204_v47 = vrot.slane %v203_v44, 1 }
  0x67   : > { %v194_v45 = vadd.f32 %v193_v43, %v192_v40  ;;  %424 = vrcp.f32 %v187_v42  ;;  %v211_v48 = vrot.slane %v210_v46, 1  ;;  %v205_v49 = vadd.f32 %v204_v47, %v203_v44 }
  0x69   : > { %426 = vrcp.f32 %v194_v45  ;;  %v212_v50 = vadd.f32 %v211_v48, %v210_v46 }
  0x71   : > { %v425_v51 = vpop.eup %424 }
  0x72   : > { %v215_v52 = vmul.f32 %v425_v51, %v205_v49 }
  0x73   : > { %v427_v53 = vpop.eup %426 }
  0x74   : > { %v216_v54 = vmul.f32 %v427_v53, %v212_v50  ;;  %v217_v55 = vmul.f32 %v425_v51, %v215_v52 }
  0x76   : > { %v218_v56 = vmul.f32 %v427_v53, %v216_v54  ;;  %v231_v57 = vsel %vm230_vm1, %v217_v55, 0.0 }
  0x78   : > { %v232_v58 = vsel %vm230_vm1, %v218_v56, 0.0 }
  0x79   : > { %v233_v59 = vadd.f32 %v232_v58, %v231_v57 }
  0x7b   : > { %234 = vadd.xlane.f32.xlu0 %v233_v59 }
 0x108   : > { %v235_v60 = vpop.xlane.xlu0 %234 }
 0x109   : > { %v236_v61 = vrot.slane %v235_v60, 4 }
 0x10b   : > { %v237_v62 = vadd.f32 %v236_v61, %v235_v60 }
 0x10d   : > { %v238_v63 = vrot.slane %v237_v62, 2 }
 0x10f   : > { %v239_v0 = vadd.f32 %v238_v63, %v237_v62 }
 0x111   : > { %v240_v1 = vrot.slane %v239_v0, 1 }
 0x113   : > { %v241_v2 = vadd.f32 %v240_v1, %v239_v0 }
 0x115   : > { %357 = vpush %v241_v2 }
 0x146   : > { %s358_s30 = spop %357 }
 0x147   : > { %v243_v3 = vstv %s358_s30 }
 0x148   : > { %244 = vst [vmem:[%s150_s18] sm:$0xff] %v243_v3 }
 0x149   : > { %471 = shalt.err (!%p468_p6)
}
 0x14a   : > { %s472_s16 = scalar_lea.hbm %s689_s4, 128  ;;  %s476_s23 = scalar_lea.hbm %s737_s1, 256 }
 0x14b   : > { %p473_p4 = scmp.ne.s32.totalorder %s689_s4, %s472_s16  ;;  %p477_p1 = scmp.lt.u32.totalorder %s689_s4, %s737_s1 }
 0x14c   : > { %p478_p2 = scmp.lt.u32.totalorder %s476_s23, %s472_s16  ;;  %p480_p8 = scmp.lt.u32.totalorder %s472_s16, %s689_s4 }
 0x14d   : > { %p474_p10 = pnand %p473_p4, %p746_p9 }
 0x14e   : > { %p479_p5 = por %p478_p2, %p477_p1 }
 0x14f   : > { %p475_p12 = pneg %p474_p10 }
 0x150   : > { %p481_p11 = por %p480_p8, %p479_p5 }
 0x152   : > { %p482_p0 = pnand %p481_p11, %p475_p12 }
 0x154   : > { %485 = shalt.err (!%p482_p0)
}
 0x155   : > { %361 = dma.vmem_to_hbm [thread:$0]  (%p746_p9), %s684_s27, 128, %s689_s4, %s246_s5  }
 0x156 PF: > { %s272_s26 = sand.u32 1, %s520_s6   ;;  %p747_p7 = scmp.ne.s32.totalorder %s742_s21, 0 }
 0x157   : > { %p748_p13 = scmp.ge.s32.totalorder %s540_s11, 2  ;;  %s273_s28 = scalar_lea.sflag [#allocation4], %s272_s26 }
 0x159   : > { %p368_p3 = pnand %p748_p13, %p747_p7 }
 0x15b   : > { %515 = dma.done.wait (!%p368_p3), %s273_s28, 128  }
 0x15c   : > { %517 = vsyncadd (!%p368_p3), %s273_s28, 4294967168  ;;  %s17_s11 = sadd.s32 1, %s540_s11   ;;  %s749_s6 = smov %s524_s7 }
 0x15d   : > { %p14_p6 = scmp.ge.s32.totalorder %s17_s11, 4   ;;  %s750_s7 = smov %s528_s8 }
 0x15e   : > { %s751_s8 = smov %s610_s20  ;;  %s752_s9 = smov %s536_s10 }
 0x15f   : > { %s753_s10 = smov %s755_s14  ;;  %16 = sbr.rel (!%p14_p6) target bundleno = 6 (0x6), region = 69 }
 0x166   :  { %278 = vsyncpa [#allocation3], 1 }
 0x167   :  { %280 = vsyncpa [#allocation3 + $0x1], 1 }
 0x168   :  { %281 = vsyncpa [#allocation4], 1 }
 0x169   :  { %283 = vsyncpa [#allocation4 + $0x1], 1 }

</bundles_post_ra>
